<compile_context>
chip_gen: v6e
topology: v6e:2x2x1
jax: 0.10.0
libtpu: 0.0.40
codegen_flags: <defaults>
</compile_context>

<pallas_src>
import math
import jax
import jax.numpy as jnp
from jax import lax
from jax.experimental import pallas as pl
from jax.experimental.pallas import tpu as pltpu

# -----------------------------
# Config (small synthetic sizes)
# -----------------------------
B = 2          # batch
S = 8          # sequence length
HIDDEN = 32    # HIDDEN_SIZE
HEADS = 4      # MULTI_HEAD
DH = HIDDEN // HEADS

# f32 for exact parity at toy sizes; use jnp.bfloat16 on v6e/v7x at production
# sizes (MXU peak is bf16; accumulation stays f32 either way).
MXU_DTYPE = jnp.float32


# -----------------------------
# Fused MHAtt kernel (single invocation, no grid)
# -----------------------------
def mhatt_kernel(q_ref, k_ref, v_ref, maskb_ref,
                 wqkv_ref, bqkv_ref, wm_ref, bm_ref, o_ref):
    # q/k/v_ref : (B*S, HIDDEN)     flattened activations
    # maskb_ref : (B, S)            additive mask bias (0.0 or -1e9)
    # wqkv_ref  : (3, HIDDEN, HIDDEN) = [Wq^T * 1/sqrt(DH), Wk^T, Wv^T]
    # bqkv_ref  : (3, 1, HIDDEN)      = [bq * 1/sqrt(DH),   bk,   bv  ]
    # wm_ref    : (HIDDEN, HIDDEN)    = Wm^T
    # bm_ref    : (1, HIDDEN)
    xq = q_ref[...]
    xk = k_ref[...]
    xv = v_ref[...]

    # Projections batched over all B*S rows (nn.Linear: y = x @ W^T + b; W^T is
    # pre-applied, 1/sqrt(DH) is pre-folded into the q weight/bias).
    qh = jnp.dot(xq.astype(MXU_DTYPE), wqkv_ref[0],
                 preferred_element_type=jnp.float32) + bqkv_ref[0]
    kh = jnp.dot(xk.astype(MXU_DTYPE), wqkv_ref[1],
                 preferred_element_type=jnp.float32) + bqkv_ref[1]
    vh = jnp.dot(xv.astype(MXU_DTYPE), wqkv_ref[2],
                 preferred_element_type=jnp.float32) + bqkv_ref[2]

    wm = wm_ref[...]            # (HIDDEN, HIDDEN)
    bm = bm_ref[...]            # (1, HIDDEN)
    maskb = maskb_ref[...]      # (B, S)

    nt_dims = (((1,), (1,)), ((), ()))   # contract last dims: Q @ K^T w/o transpose

    for b in range(B):                   # unrolled at trace time (B = 2)
        rows = slice(b * S, (b + 1) * S)
        q_b = qh[rows, :]                # (S, HIDDEN)
        k_b = kh[rows, :]
        v_b = vh[rows, :]
        # Hoist the additive-mask broadcast once per batch (not per head).
        bias_b = jnp.broadcast_to(maskb[b:b + 1, :], (S, S))

        out_b = None
        for h in range(HEADS):           # unrolled at trace time (HEADS = 4)
            cs = slice(h * DH, (h + 1) * DH)
            q_hd = q_b[:, cs].astype(MXU_DTYPE)   # (S, DH)
            k_hd = k_b[:, cs].astype(MXU_DTYPE)
            v_hd = v_b[:, cs].astype(MXU_DTYPE)

            scores = lax.dot_general(q_hd, k_hd, nt_dims,
                                     preferred_element_type=jnp.float32) + bias_b

            # Numerically stable softmax (exact f32; EUP is idle anyway).
            m_max = jnp.max(scores, axis=-1, keepdims=True)
            p = jnp.exp(scores - m_max)
            denom = jnp.sum(p, axis=-1, keepdims=True)
            att = p / denom
            # TODO(synk): dropout(att) omitted (eval semantics / p == 0).

            head = jnp.dot(att.astype(MXU_DTYPE), v_hd,
                           preferred_element_type=jnp.float32)        # (S, DH)
            # Per-head merge accumulation (sublane slice of Wm^T) replaces the
            # lane-concat of head outputs + single big merge matmul.
            contrib = jnp.dot(head.astype(MXU_DTYPE), wm[cs, :],
                              preferred_element_type=jnp.float32)     # (S, HIDDEN)
            out_b = contrib if out_b is None else out_b + contrib

        o_ref[rows, :] = (out_b + bm).astype(o_ref.dtype)


def mhatt_forward(kparams, v, k, q, mask_f):
    """Fused MHAtt forward. v/k/q: (B, S, HIDDEN); mask_f: (B,1,1,S), 1.0 = masked."""
    q2 = q.reshape(B * S, HIDDEN)
    k2 = k.reshape(B * S, HIDDEN)
    v2 = v.reshape(B * S, HIDDEN)
    mask_bias = mask_f.reshape(B, S) * jnp.float32(-1e9)   # additive bias (0 / -1e9)

    vmem = pl.BlockSpec(memory_space=pltpu.MemorySpace.VMEM)
    out = pl.pallas_call(
        mhatt_kernel,
        out_shape=jax.ShapeDtypeStruct((B * S, HIDDEN), jnp.float32),
        in_specs=[vmem] * 8,
        out_specs=vmem,
    )(q2, k2, v2, mask_bias,
      kparams["wqkv_t"], kparams["bqkv"], kparams["wm_t"], kparams["bm2"])
    return out.reshape(B, S, HIDDEN)


# -----------------------------
# One-time parameter packing (pre-transpose / stack / scale-fold, outside hot path)
# -----------------------------
def prepare_kernel_params(p, mxu_dtype=jnp.float32):
    scale = jnp.float32(1.0 / math.sqrt(DH))
    wqkv_t = jnp.stack([p["wq"].T * scale, p["wk"].T, p["wv"].T], axis=0)   # (3, H, H)
    bqkv = jnp.stack([p["bq"] * scale, p["bk"], p["bv"]], axis=0)           # (3, H)
    return {
        "wqkv_t": wqkv_t.astype(mxu_dtype),
        "bqkv": bqkv.reshape(3, 1, HIDDEN).astype(jnp.float32),
        "wm_t": p["wm"].T.astype(mxu_dtype),
        "bm2": p["bm"].reshape(1, HIDDEN).astype(jnp.float32),
    }


# -----------------------------
# Pure-JAX reference (torch-faithful: masked_fill semantics, f32 matmuls)
# -----------------------------
def mhatt_reference(p, v, k, q, mask_f):
    with jax.default_matmul_precision("float32"):
        def lin(x, w, b):
            return x @ w.T + b

        def proj(x, w, b):
            y = lin(x, w, b)
            return y.reshape(B, S, HEADS, DH).transpose(0, 2, 1, 3)

        vh = proj(v, p["wv"], p["bv"])
        kh = proj(k, p["wk"], p["bk"])
        qh = proj(q, p["wq"], p["bq"])
        scores = jnp.einsum("bhqd,bhkd->bhqk", qh, kh) / math.sqrt(DH)
        scores = jnp.where(mask_f > 0.5, -1e9, scores)
        att = jax.nn.softmax(scores, axis=-1)
        atted = jnp.einsum("bhqk,bhkd->bhqd", att, vh)
        atted = atted.transpose(0, 2, 1, 3).reshape(B, S, HIDDEN)
        return lin(atted, p["wm"], p["bm"])


# -----------------------------
# Deterministic parameter init (torch nn.Linear-like uniform)
# -----------------------------
def init_params(key):
    bound = 1.0 / math.sqrt(HIDDEN)
    names = ["wv", "bv", "wk", "bk", "wq", "bq", "wm", "bm"]
    keys = jax.random.split(key, len(names))
    p = {}
    for name, kk in zip(names, keys):
        if name.startswith("w"):
            p[name] = jax.random.uniform(kk, (HIDDEN, HIDDEN), jnp.float32, -bound, bound)
        else:
            p[name] = jax.random.uniform(kk, (HIDDEN,), jnp.float32, -bound, bound)
    return p


if __name__ == "__main__":
    root = jax.random.PRNGKey(0)
    k_par, k_v, k_k, k_q = jax.random.split(root, 4)

    params = init_params(k_par)
    kparams = prepare_kernel_params(params, MXU_DTYPE)

    v = jax.random.normal(k_v, (B, S, HIDDEN), jnp.float32)
    k = jax.random.normal(k_k, (B, S, HIDDEN), jnp.float32)
    q = jax.random.normal(k_q, (B, S, HIDDEN), jnp.float32)

    # mask: pad out the last few positions of each sequence (1.0 = masked)
    lens = jnp.array([S, S - 2], dtype=jnp.int32)
    pos = jnp.arange(S)[None, :]                       # (1, S)
    mask_bool = pos >= lens[:, None]                   # (B, S)
    mask_f = mask_bool.astype(jnp.float32).reshape(B, 1, 1, S)

    out = mhatt_forward(kparams, v, k, q, mask_f)
    out = jax.block_until_ready(out)

    ref = mhatt_reference(params, v, k, q, mask_f)
    assert out.shape == (B, S, HIDDEN)
    # Exact-f32 kernel path (exact softmax divide, f32 MXU accumulation); the
    # additive -1e9 mask is numerically identical to masked_fill after softmax.
    assert jnp.allclose(out, ref, atol=1e-4, rtol=1e-4), "mismatch vs reference"

    print("KERNEL_OK")
</pallas_src>

<mosaic_0001>
module attributes {stable_mosaic.version = 11 : i64} {
  func.func @mhatt_kernel(%arg0: memref<16x32xf32, #tpu.memory_space<vmem>>, %arg1: memref<16x32xf32, #tpu.memory_space<vmem>>, %arg2: memref<16x32xf32, #tpu.memory_space<vmem>>, %arg3: memref<2x8xf32, #tpu.memory_space<vmem>>, %arg4: memref<3x32x32xf32, #tpu.memory_space<vmem>>, %arg5: memref<3x1x32xf32, #tpu.memory_space<vmem>>, %arg6: memref<32x32xf32, #tpu.memory_space<vmem>>, %arg7: memref<1x32xf32, #tpu.memory_space<vmem>>, %arg8: memref<16x32xf32, #tpu.memory_space<vmem>>) attributes {dimension_semantics = [], scalar_prefetch = 0 : i64, scratch_operands = 0 : i64, tpu.core_type = #tpu.core_type<tc>} {
    %c0 = arith.constant 0 : index
    %c0_0 = arith.constant 0 : index
    %0 = vector.load %arg0[%c0, %c0_0] : memref<16x32xf32, #tpu.memory_space<vmem>>, vector<16x32xf32>
    %c0_1 = arith.constant 0 : index
    %c0_2 = arith.constant 0 : index
    %1 = vector.load %arg1[%c0_1, %c0_2] : memref<16x32xf32, #tpu.memory_space<vmem>>, vector<16x32xf32>
    %c0_3 = arith.constant 0 : index
    %c0_4 = arith.constant 0 : index
    %2 = vector.load %arg2[%c0_3, %c0_4] : memref<16x32xf32, #tpu.memory_space<vmem>>, vector<16x32xf32>
    %c0_5 = arith.constant 0 : index
    %c0_6 = arith.constant 0 : index
    %c0_7 = arith.constant 0 : index
    %3 = vector.load %arg4[%c0_5, %c0_6, %c0_7] : memref<3x32x32xf32, #tpu.memory_space<vmem>>, vector<1x32x32xf32>
    %4 = vector.shape_cast %3 : vector<1x32x32xf32> to vector<32x32xf32>
    %cst = arith.constant dense<0.000000e+00> : vector<16x32xf32>
    %5 = tpu.matmul %0, %4, %cst {dimension_numbers = #tpu.dot_dimension_numbers<[1], [0], [0], [1], [0, 0, 1, 1], [], []>} : vector<16x32xf32>, vector<32x32xf32>, vector<16x32xf32> -> vector<16x32xf32>
    %c0_8 = arith.constant 0 : index
    %c0_9 = arith.constant 0 : index
    %c0_10 = arith.constant 0 : index
    %6 = vector.load %arg5[%c0_8, %c0_9, %c0_10] : memref<3x1x32xf32, #tpu.memory_space<vmem>>, vector<1x1x32xf32>
    %7 = vector.shape_cast %6 : vector<1x1x32xf32> to vector<1x32xf32>
    %8 = vector.broadcast %7 : vector<1x32xf32> to vector<16x32xf32>
    %9 = arith.addf %5, %8 : vector<16x32xf32>
    %c1 = arith.constant 1 : index
    %c0_11 = arith.constant 0 : index
    %c0_12 = arith.constant 0 : index
    %10 = vector.load %arg4[%c1, %c0_11, %c0_12] : memref<3x32x32xf32, #tpu.memory_space<vmem>>, vector<1x32x32xf32>
    %11 = vector.shape_cast %10 : vector<1x32x32xf32> to vector<32x32xf32>
    %cst_13 = arith.constant dense<0.000000e+00> : vector<16x32xf32>
    %12 = tpu.matmul %1, %11, %cst_13 {dimension_numbers = #tpu.dot_dimension_numbers<[1], [0], [0], [1], [0, 0, 1, 1], [], []>} : vector<16x32xf32>, vector<32x32xf32>, vector<16x32xf32> -> vector<16x32xf32>
    %c1_14 = arith.constant 1 : index
    %c0_15 = arith.constant 0 : index
    %c0_16 = arith.constant 0 : index
    %13 = vector.load %arg5[%c1_14, %c0_15, %c0_16] : memref<3x1x32xf32, #tpu.memory_space<vmem>>, vector<1x1x32xf32>
    %14 = vector.shape_cast %13 : vector<1x1x32xf32> to vector<1x32xf32>
    %15 = vector.broadcast %14 : vector<1x32xf32> to vector<16x32xf32>
    %16 = arith.addf %12, %15 : vector<16x32xf32>
    %c2 = arith.constant 2 : index
    %c0_17 = arith.constant 0 : index
    %c0_18 = arith.constant 0 : index
    %17 = vector.load %arg4[%c2, %c0_17, %c0_18] : memref<3x32x32xf32, #tpu.memory_space<vmem>>, vector<1x32x32xf32>
    %18 = vector.shape_cast %17 : vector<1x32x32xf32> to vector<32x32xf32>
    %cst_19 = arith.constant dense<0.000000e+00> : vector<16x32xf32>
    %19 = tpu.matmul %2, %18, %cst_19 {dimension_numbers = #tpu.dot_dimension_numbers<[1], [0], [0], [1], [0, 0, 1, 1], [], []>} : vector<16x32xf32>, vector<32x32xf32>, vector<16x32xf32> -> vector<16x32xf32>
    %c2_20 = arith.constant 2 : index
    %c0_21 = arith.constant 0 : index
    %c0_22 = arith.constant 0 : index
    %20 = vector.load %arg5[%c2_20, %c0_21, %c0_22] : memref<3x1x32xf32, #tpu.memory_space<vmem>>, vector<1x1x32xf32>
    %21 = vector.shape_cast %20 : vector<1x1x32xf32> to vector<1x32xf32>
    %22 = vector.broadcast %21 : vector<1x32xf32> to vector<16x32xf32>
    %23 = arith.addf %19, %22 : vector<16x32xf32>
    %c0_23 = arith.constant 0 : index
    %c0_24 = arith.constant 0 : index
    %24 = vector.load %arg6[%c0_23, %c0_24] : memref<32x32xf32, #tpu.memory_space<vmem>>, vector<32x32xf32>
    %c0_25 = arith.constant 0 : index
    %c0_26 = arith.constant 0 : index
    %25 = vector.load %arg7[%c0_25, %c0_26] : memref<1x32xf32, #tpu.memory_space<vmem>>, vector<1x32xf32>
    %c0_27 = arith.constant 0 : index
    %c0_28 = arith.constant 0 : index
    %26 = vector.load %arg3[%c0_27, %c0_28] : memref<2x8xf32, #tpu.memory_space<vmem>>, vector<2x8xf32>
    %27 = vector.extract_strided_slice %9 {offsets = [0, 0], sizes = [8, 32], strides = [1, 1]} : vector<16x32xf32> to vector<8x32xf32>
    %28 = vector.extract_strided_slice %16 {offsets = [0, 0], sizes = [8, 32], strides = [1, 1]} : vector<16x32xf32> to vector<8x32xf32>
    %29 = vector.extract_strided_slice %23 {offsets = [0, 0], sizes = [8, 32], strides = [1, 1]} : vector<16x32xf32> to vector<8x32xf32>
    %30 = vector.extract_strided_slice %26 {offsets = [0, 0], sizes = [1, 8], strides = [1, 1]} : vector<2x8xf32> to vector<1x8xf32>
    %31 = vector.shape_cast %30 : vector<1x8xf32> to vector<1x8xf32>
    %32 = vector.broadcast %31 : vector<1x8xf32> to vector<8x8xf32>
    %33 = vector.extract_strided_slice %27 {offsets = [0, 0], sizes = [8, 8], strides = [1, 1]} : vector<8x32xf32> to vector<8x8xf32>
    %34 = vector.extract_strided_slice %28 {offsets = [0, 0], sizes = [8, 8], strides = [1, 1]} : vector<8x32xf32> to vector<8x8xf32>
    %35 = vector.extract_strided_slice %29 {offsets = [0, 0], sizes = [8, 8], strides = [1, 1]} : vector<8x32xf32> to vector<8x8xf32>
    %cst_29 = arith.constant dense<0.000000e+00> : vector<8x8xf32>
    %36 = tpu.matmul %33, %34, %cst_29 {dimension_numbers = #tpu.dot_dimension_numbers<[1], [1], [0], [0], [0, 0, 1, 0], [], []>} : vector<8x8xf32>, vector<8x8xf32>, vector<8x8xf32> -> vector<8x8xf32>
    %37 = arith.addf %36, %32 : vector<8x8xf32>
    %cst_30 = arith.constant dense<0xFF800000> : vector<8xf32>
    %38 = vector.multi_reduction <maximumf>, %37, %cst_30 [1] : vector<8x8xf32> to vector<8xf32>
    %39 = vector.shape_cast %38 : vector<8xf32> to vector<8x1xf32>
    %40 = vector.broadcast %39 : vector<8x1xf32> to vector<8x8xf32>
    %41 = arith.subf %37, %40 : vector<8x8xf32>
    %42 = math.exp %41 : vector<8x8xf32>
    %cst_31 = arith.constant dense<0.000000e+00> : vector<8xf32>
    %43 = vector.multi_reduction <add>, %42, %cst_31 [1] : vector<8x8xf32> to vector<8xf32>
    %44 = vector.shape_cast %43 : vector<8xf32> to vector<8x1xf32>
    %45 = vector.broadcast %44 : vector<8x1xf32> to vector<8x8xf32>
    %46 = arith.divf %42, %45 : vector<8x8xf32>
    %cst_32 = arith.constant dense<0.000000e+00> : vector<8x8xf32>
    %47 = tpu.matmul %46, %35, %cst_32 {dimension_numbers = #tpu.dot_dimension_numbers<[1], [0], [0], [1], [0, 0, 1, 1], [], []>} : vector<8x8xf32>, vector<8x8xf32>, vector<8x8xf32> -> vector<8x8xf32>
    %48 = vector.extract_strided_slice %24 {offsets = [0, 0], sizes = [8, 32], strides = [1, 1]} : vector<32x32xf32> to vector<8x32xf32>
    %cst_33 = arith.constant dense<0.000000e+00> : vector<8x32xf32>
    %49 = tpu.matmul %47, %48, %cst_33 {dimension_numbers = #tpu.dot_dimension_numbers<[1], [0], [0], [1], [0, 0, 1, 1], [], []>} : vector<8x8xf32>, vector<8x32xf32>, vector<8x32xf32> -> vector<8x32xf32>
    %50 = vector.extract_strided_slice %27 {offsets = [0, 8], sizes = [8, 8], strides = [1, 1]} : vector<8x32xf32> to vector<8x8xf32>
    %51 = vector.extract_strided_slice %28 {offsets = [0, 8], sizes = [8, 8], strides = [1, 1]} : vector<8x32xf32> to vector<8x8xf32>
    %52 = vector.extract_strided_slice %29 {offsets = [0, 8], sizes = [8, 8], strides = [1, 1]} : vector<8x32xf32> to vector<8x8xf32>
    %cst_34 = arith.constant dense<0.000000e+00> : vector<8x8xf32>
    %53 = tpu.matmul %50, %51, %cst_34 {dimension_numbers = #tpu.dot_dimension_numbers<[1], [1], [0], [0], [0, 0, 1, 0], [], []>} : vector<8x8xf32>, vector<8x8xf32>, vector<8x8xf32> -> vector<8x8xf32>
    %54 = arith.addf %53, %32 : vector<8x8xf32>
    %cst_35 = arith.constant dense<0xFF800000> : vector<8xf32>
    %55 = vector.multi_reduction <maximumf>, %54, %cst_35 [1] : vector<8x8xf32> to vector<8xf32>
    %56 = vector.shape_cast %55 : vector<8xf32> to vector<8x1xf32>
    %57 = vector.broadcast %56 : vector<8x1xf32> to vector<8x8xf32>
    %58 = arith.subf %54, %57 : vector<8x8xf32>
    %59 = math.exp %58 : vector<8x8xf32>
    %cst_36 = arith.constant dense<0.000000e+00> : vector<8xf32>
    %60 = vector.multi_reduction <add>, %59, %cst_36 [1] : vector<8x8xf32> to vector<8xf32>
    %61 = vector.shape_cast %60 : vector<8xf32> to vector<8x1xf32>
    %62 = vector.broadcast %61 : vector<8x1xf32> to vector<8x8xf32>
    %63 = arith.divf %59, %62 : vector<8x8xf32>
    %cst_37 = arith.constant dense<0.000000e+00> : vector<8x8xf32>
    %64 = tpu.matmul %63, %52, %cst_37 {dimension_numbers = #tpu.dot_dimension_numbers<[1], [0], [0], [1], [0, 0, 1, 1], [], []>} : vector<8x8xf32>, vector<8x8xf32>, vector<8x8xf32> -> vector<8x8xf32>
    %65 = vector.extract_strided_slice %24 {offsets = [8, 0], sizes = [8, 32], strides = [1, 1]} : vector<32x32xf32> to vector<8x32xf32>
    %cst_38 = arith.constant dense<0.000000e+00> : vector<8x32xf32>
    %66 = tpu.matmul %64, %65, %cst_38 {dimension_numbers = #tpu.dot_dimension_numbers<[1], [0], [0], [1], [0, 0, 1, 1], [], []>} : vector<8x8xf32>, vector<8x32xf32>, vector<8x32xf32> -> vector<8x32xf32>
    %67 = arith.addf %49, %66 : vector<8x32xf32>
    %68 = vector.extract_strided_slice %27 {offsets = [0, 16], sizes = [8, 8], strides = [1, 1]} : vector<8x32xf32> to vector<8x8xf32>
    %69 = vector.extract_strided_slice %28 {offsets = [0, 16], sizes = [8, 8], strides = [1, 1]} : vector<8x32xf32> to vector<8x8xf32>
    %70 = vector.extract_strided_slice %29 {offsets = [0, 16], sizes = [8, 8], strides = [1, 1]} : vector<8x32xf32> to vector<8x8xf32>
    %cst_39 = arith.constant dense<0.000000e+00> : vector<8x8xf32>
    %71 = tpu.matmul %68, %69, %cst_39 {dimension_numbers = #tpu.dot_dimension_numbers<[1], [1], [0], [0], [0, 0, 1, 0], [], []>} : vector<8x8xf32>, vector<8x8xf32>, vector<8x8xf32> -> vector<8x8xf32>
    %72 = arith.addf %71, %32 : vector<8x8xf32>
    %cst_40 = arith.constant dense<0xFF800000> : vector<8xf32>
    %73 = vector.multi_reduction <maximumf>, %72, %cst_40 [1] : vector<8x8xf32> to vector<8xf32>
    %74 = vector.shape_cast %73 : vector<8xf32> to vector<8x1xf32>
    %75 = vector.broadcast %74 : vector<8x1xf32> to vector<8x8xf32>
    %76 = arith.subf %72, %75 : vector<8x8xf32>
    %77 = math.exp %76 : vector<8x8xf32>
    %cst_41 = arith.constant dense<0.000000e+00> : vector<8xf32>
    %78 = vector.multi_reduction <add>, %77, %cst_41 [1] : vector<8x8xf32> to vector<8xf32>
    %79 = vector.shape_cast %78 : vector<8xf32> to vector<8x1xf32>
    %80 = vector.broadcast %79 : vector<8x1xf32> to vector<8x8xf32>
    %81 = arith.divf %77, %80 : vector<8x8xf32>
    %cst_42 = arith.constant dense<0.000000e+00> : vector<8x8xf32>
    %82 = tpu.matmul %81, %70, %cst_42 {dimension_numbers = #tpu.dot_dimension_numbers<[1], [0], [0], [1], [0, 0, 1, 1], [], []>} : vector<8x8xf32>, vector<8x8xf32>, vector<8x8xf32> -> vector<8x8xf32>
    %83 = vector.extract_strided_slice %24 {offsets = [16, 0], sizes = [8, 32], strides = [1, 1]} : vector<32x32xf32> to vector<8x32xf32>
    %cst_43 = arith.constant dense<0.000000e+00> : vector<8x32xf32>
    %84 = tpu.matmul %82, %83, %cst_43 {dimension_numbers = #tpu.dot_dimension_numbers<[1], [0], [0], [1], [0, 0, 1, 1], [], []>} : vector<8x8xf32>, vector<8x32xf32>, vector<8x32xf32> -> vector<8x32xf32>
    %85 = arith.addf %67, %84 : vector<8x32xf32>
    %86 = vector.extract_strided_slice %27 {offsets = [0, 24], sizes = [8, 8], strides = [1, 1]} : vector<8x32xf32> to vector<8x8xf32>
    %87 = vector.extract_strided_slice %28 {offsets = [0, 24], sizes = [8, 8], strides = [1, 1]} : vector<8x32xf32> to vector<8x8xf32>
    %88 = vector.extract_strided_slice %29 {offsets = [0, 24], sizes = [8, 8], strides = [1, 1]} : vector<8x32xf32> to vector<8x8xf32>
    %cst_44 = arith.constant dense<0.000000e+00> : vector<8x8xf32>
    %89 = tpu.matmul %86, %87, %cst_44 {dimension_numbers = #tpu.dot_dimension_numbers<[1], [1], [0], [0], [0, 0, 1, 0], [], []>} : vector<8x8xf32>, vector<8x8xf32>, vector<8x8xf32> -> vector<8x8xf32>
    %90 = arith.addf %89, %32 : vector<8x8xf32>
    %cst_45 = arith.constant dense<0xFF800000> : vector<8xf32>
    %91 = vector.multi_reduction <maximumf>, %90, %cst_45 [1] : vector<8x8xf32> to vector<8xf32>
    %92 = vector.shape_cast %91 : vector<8xf32> to vector<8x1xf32>
    %93 = vector.broadcast %92 : vector<8x1xf32> to vector<8x8xf32>
    %94 = arith.subf %90, %93 : vector<8x8xf32>
    %95 = math.exp %94 : vector<8x8xf32>
    %cst_46 = arith.constant dense<0.000000e+00> : vector<8xf32>
    %96 = vector.multi_reduction <add>, %95, %cst_46 [1] : vector<8x8xf32> to vector<8xf32>
    %97 = vector.shape_cast %96 : vector<8xf32> to vector<8x1xf32>
    %98 = vector.broadcast %97 : vector<8x1xf32> to vector<8x8xf32>
    %99 = arith.divf %95, %98 : vector<8x8xf32>
    %cst_47 = arith.constant dense<0.000000e+00> : vector<8x8xf32>
    %100 = tpu.matmul %99, %88, %cst_47 {dimension_numbers = #tpu.dot_dimension_numbers<[1], [0], [0], [1], [0, 0, 1, 1], [], []>} : vector<8x8xf32>, vector<8x8xf32>, vector<8x8xf32> -> vector<8x8xf32>
    %101 = vector.extract_strided_slice %24 {offsets = [24, 0], sizes = [8, 32], strides = [1, 1]} : vector<32x32xf32> to vector<8x32xf32>
    %cst_48 = arith.constant dense<0.000000e+00> : vector<8x32xf32>
    %102 = tpu.matmul %100, %101, %cst_48 {dimension_numbers = #tpu.dot_dimension_numbers<[1], [0], [0], [1], [0, 0, 1, 1], [], []>} : vector<8x8xf32>, vector<8x32xf32>, vector<8x32xf32> -> vector<8x32xf32>
    %103 = arith.addf %85, %102 : vector<8x32xf32>
    %104 = vector.broadcast %25 : vector<1x32xf32> to vector<8x32xf32>
    %105 = arith.addf %103, %104 : vector<8x32xf32>
    %c0_49 = arith.constant 0 : index
    %c0_50 = arith.constant 0 : index
    %106 = vector.load %arg8[%c0_49, %c0_50] : memref<16x32xf32, #tpu.memory_space<vmem>>, vector<8x32xf32>
    tpu.vector_store %arg8[%c0_49, %c0_50], %105 {strides = array<i32>} : memref<16x32xf32, #tpu.memory_space<vmem>>, vector<8x32xf32>,
    %107 = vector.extract_strided_slice %9 {offsets = [8, 0], sizes = [8, 32], strides = [1, 1]} : vector<16x32xf32> to vector<8x32xf32>
    %108 = vector.extract_strided_slice %16 {offsets = [8, 0], sizes = [8, 32], strides = [1, 1]} : vector<16x32xf32> to vector<8x32xf32>
    %109 = vector.extract_strided_slice %23 {offsets = [8, 0], sizes = [8, 32], strides = [1, 1]} : vector<16x32xf32> to vector<8x32xf32>
    %110 = vector.extract_strided_slice %26 {offsets = [1, 0], sizes = [1, 8], strides = [1, 1]} : vector<2x8xf32> to vector<1x8xf32>
    %111 = vector.shape_cast %110 : vector<1x8xf32> to vector<1x8xf32>
    %112 = vector.broadcast %111 : vector<1x8xf32> to vector<8x8xf32>
    %113 = vector.extract_strided_slice %107 {offsets = [0, 0], sizes = [8, 8], strides = [1, 1]} : vector<8x32xf32> to vector<8x8xf32>
    %114 = vector.extract_strided_slice %108 {offsets = [0, 0], sizes = [8, 8], strides = [1, 1]} : vector<8x32xf32> to vector<8x8xf32>
    %115 = vector.extract_strided_slice %109 {offsets = [0, 0], sizes = [8, 8], strides = [1, 1]} : vector<8x32xf32> to vector<8x8xf32>
    %cst_51 = arith.constant dense<0.000000e+00> : vector<8x8xf32>
    %116 = tpu.matmul %113, %114, %cst_51 {dimension_numbers = #tpu.dot_dimension_numbers<[1], [1], [0], [0], [0, 0, 1, 0], [], []>} : vector<8x8xf32>, vector<8x8xf32>, vector<8x8xf32> -> vector<8x8xf32>
    %117 = arith.addf %116, %112 : vector<8x8xf32>
    %cst_52 = arith.constant dense<0xFF800000> : vector<8xf32>
    %118 = vector.multi_reduction <maximumf>, %117, %cst_52 [1] : vector<8x8xf32> to vector<8xf32>
    %119 = vector.shape_cast %118 : vector<8xf32> to vector<8x1xf32>
    %120 = vector.broadcast %119 : vector<8x1xf32> to vector<8x8xf32>
    %121 = arith.subf %117, %120 : vector<8x8xf32>
    %122 = math.exp %121 : vector<8x8xf32>
    %cst_53 = arith.constant dense<0.000000e+00> : vector<8xf32>
    %123 = vector.multi_reduction <add>, %122, %cst_53 [1] : vector<8x8xf32> to vector<8xf32>
    %124 = vector.shape_cast %123 : vector<8xf32> to vector<8x1xf32>
    %125 = vector.broadcast %124 : vector<8x1xf32> to vector<8x8xf32>
    %126 = arith.divf %122, %125 : vector<8x8xf32>
    %cst_54 = arith.constant dense<0.000000e+00> : vector<8x8xf32>
    %127 = tpu.matmul %126, %115, %cst_54 {dimension_numbers = #tpu.dot_dimension_numbers<[1], [0], [0], [1], [0, 0, 1, 1], [], []>} : vector<8x8xf32>, vector<8x8xf32>, vector<8x8xf32> -> vector<8x8xf32>
    %128 = vector.extract_strided_slice %24 {offsets = [0, 0], sizes = [8, 32], strides = [1, 1]} : vector<32x32xf32> to vector<8x32xf32>
    %cst_55 = arith.constant dense<0.000000e+00> : vector<8x32xf32>
    %129 = tpu.matmul %127, %128, %cst_55 {dimension_numbers = #tpu.dot_dimension_numbers<[1], [0], [0], [1], [0, 0, 1, 1], [], []>} : vector<8x8xf32>, vector<8x32xf32>, vector<8x32xf32> -> vector<8x32xf32>
    %130 = vector.extract_strided_slice %107 {offsets = [0, 8], sizes = [8, 8], strides = [1, 1]} : vector<8x32xf32> to vector<8x8xf32>
    %131 = vector.extract_strided_slice %108 {offsets = [0, 8], sizes = [8, 8], strides = [1, 1]} : vector<8x32xf32> to vector<8x8xf32>
    %132 = vector.extract_strided_slice %109 {offsets = [0, 8], sizes = [8, 8], strides = [1, 1]} : vector<8x32xf32> to vector<8x8xf32>
    %cst_56 = arith.constant dense<0.000000e+00> : vector<8x8xf32>
    %133 = tpu.matmul %130, %131, %cst_56 {dimension_numbers = #tpu.dot_dimension_numbers<[1], [1], [0], [0], [0, 0, 1, 0], [], []>} : vector<8x8xf32>, vector<8x8xf32>, vector<8x8xf32> -> vector<8x8xf32>
    %134 = arith.addf %133, %112 : vector<8x8xf32>
    %cst_57 = arith.constant dense<0xFF800000> : vector<8xf32>
    %135 = vector.multi_reduction <maximumf>, %134, %cst_57 [1] : vector<8x8xf32> to vector<8xf32>
    %136 = vector.shape_cast %135 : vector<8xf32> to vector<8x1xf32>
    %137 = vector.broadcast %136 : vector<8x1xf32> to vector<8x8xf32>
    %138 = arith.subf %134, %137 : vector<8x8xf32>
    %139 = math.exp %138 : vector<8x8xf32>
    %cst_58 = arith.constant dense<0.000000e+00> : vector<8xf32>
    %140 = vector.multi_reduction <add>, %139, %cst_58 [1] : vector<8x8xf32> to vector<8xf32>
    %141 = vector.shape_cast %140 : vector<8xf32> to vector<8x1xf32>
    %142 = vector.broadcast %141 : vector<8x1xf32> to vector<8x8xf32>
    %143 = arith.divf %139, %142 : vector<8x8xf32>
    %cst_59 = arith.constant dense<0.000000e+00> : vector<8x8xf32>
    %144 = tpu.matmul %143, %132, %cst_59 {dimension_numbers = #tpu.dot_dimension_numbers<[1], [0], [0], [1], [0, 0, 1, 1], [], []>} : vector<8x8xf32>, vector<8x8xf32>, vector<8x8xf32> -> vector<8x8xf32>
    %145 = vector.extract_strided_slice %24 {offsets = [8, 0], sizes = [8, 32], strides = [1, 1]} : vector<32x32xf32> to vector<8x32xf32>
    %cst_60 = arith.constant dense<0.000000e+00> : vector<8x32xf32>
    %146 = tpu.matmul %144, %145, %cst_60 {dimension_numbers = #tpu.dot_dimension_numbers<[1], [0], [0], [1], [0, 0, 1, 1], [], []>} : vector<8x8xf32>, vector<8x32xf32>, vector<8x32xf32> -> vector<8x32xf32>
    %147 = arith.addf %129, %146 : vector<8x32xf32>
    %148 = vector.extract_strided_slice %107 {offsets = [0, 16], sizes = [8, 8], strides = [1, 1]} : vector<8x32xf32> to vector<8x8xf32>
    %149 = vector.extract_strided_slice %108 {offsets = [0, 16], sizes = [8, 8], strides = [1, 1]} : vector<8x32xf32> to vector<8x8xf32>
    %150 = vector.extract_strided_slice %109 {offsets = [0, 16], sizes = [8, 8], strides = [1, 1]} : vector<8x32xf32> to vector<8x8xf32>
    %cst_61 = arith.constant dense<0.000000e+00> : vector<8x8xf32>
    %151 = tpu.matmul %148, %149, %cst_61 {dimension_numbers = #tpu.dot_dimension_numbers<[1], [1], [0], [0], [0, 0, 1, 0], [], []>} : vector<8x8xf32>, vector<8x8xf32>, vector<8x8xf32> -> vector<8x8xf32>
    %152 = arith.addf %151, %112 : vector<8x8xf32>
    %cst_62 = arith.constant dense<0xFF800000> : vector<8xf32>
    %153 = vector.multi_reduction <maximumf>, %152, %cst_62 [1] : vector<8x8xf32> to vector<8xf32>
    %154 = vector.shape_cast %153 : vector<8xf32> to vector<8x1xf32>
    %155 = vector.broadcast %154 : vector<8x1xf32> to vector<8x8xf32>
    %156 = arith.subf %152, %155 : vector<8x8xf32>
    %157 = math.exp %156 : vector<8x8xf32>
    %cst_63 = arith.constant dense<0.000000e+00> : vector<8xf32>
    %158 = vector.multi_reduction <add>, %157, %cst_63 [1] : vector<8x8xf32> to vector<8xf32>
    %159 = vector.shape_cast %158 : vector<8xf32> to vector<8x1xf32>
    %160 = vector.broadcast %159 : vector<8x1xf32> to vector<8x8xf32>
    %161 = arith.divf %157, %160 : vector<8x8xf32>
    %cst_64 = arith.constant dense<0.000000e+00> : vector<8x8xf32>
    %162 = tpu.matmul %161, %150, %cst_64 {dimension_numbers = #tpu.dot_dimension_numbers<[1], [0], [0], [1], [0, 0, 1, 1], [], []>} : vector<8x8xf32>, vector<8x8xf32>, vector<8x8xf32> -> vector<8x8xf32>
    %163 = vector.extract_strided_slice %24 {offsets = [16, 0], sizes = [8, 32], strides = [1, 1]} : vector<32x32xf32> to vector<8x32xf32>
    %cst_65 = arith.constant dense<0.000000e+00> : vector<8x32xf32>
    %164 = tpu.matmul %162, %163, %cst_65 {dimension_numbers = #tpu.dot_dimension_numbers<[1], [0], [0], [1], [0, 0, 1, 1], [], []>} : vector<8x8xf32>, vector<8x32xf32>, vector<8x32xf32> -> vector<8x32xf32>
    %165 = arith.addf %147, %164 : vector<8x32xf32>
    %166 = vector.extract_strided_slice %107 {offsets = [0, 24], sizes = [8, 8], strides = [1, 1]} : vector<8x32xf32> to vector<8x8xf32>
    %167 = vector.extract_strided_slice %108 {offsets = [0, 24], sizes = [8, 8], strides = [1, 1]} : vector<8x32xf32> to vector<8x8xf32>
    %168 = vector.extract_strided_slice %109 {offsets = [0, 24], sizes = [8, 8], strides = [1, 1]} : vector<8x32xf32> to vector<8x8xf32>
    %cst_66 = arith.constant dense<0.000000e+00> : vector<8x8xf32>
    %169 = tpu.matmul %166, %167, %cst_66 {dimension_numbers = #tpu.dot_dimension_numbers<[1], [1], [0], [0], [0, 0, 1, 0], [], []>} : vector<8x8xf32>, vector<8x8xf32>, vector<8x8xf32> -> vector<8x8xf32>
    %170 = arith.addf %169, %112 : vector<8x8xf32>
    %cst_67 = arith.constant dense<0xFF800000> : vector<8xf32>
    %171 = vector.multi_reduction <maximumf>, %170, %cst_67 [1] : vector<8x8xf32> to vector<8xf32>
    %172 = vector.shape_cast %171 : vector<8xf32> to vector<8x1xf32>
    %173 = vector.broadcast %172 : vector<8x1xf32> to vector<8x8xf32>
    %174 = arith.subf %170, %173 : vector<8x8xf32>
    %175 = math.exp %174 : vector<8x8xf32>
    %cst_68 = arith.constant dense<0.000000e+00> : vector<8xf32>
    %176 = vector.multi_reduction <add>, %175, %cst_68 [1] : vector<8x8xf32> to vector<8xf32>
    %177 = vector.shape_cast %176 : vector<8xf32> to vector<8x1xf32>
    %178 = vector.broadcast %177 : vector<8x1xf32> to vector<8x8xf32>
    %179 = arith.divf %175, %178 : vector<8x8xf32>
    %cst_69 = arith.constant dense<0.000000e+00> : vector<8x8xf32>
    %180 = tpu.matmul %179, %168, %cst_69 {dimension_numbers = #tpu.dot_dimension_numbers<[1], [0], [0], [1], [0, 0, 1, 1], [], []>} : vector<8x8xf32>, vector<8x8xf32>, vector<8x8xf32> -> vector<8x8xf32>
    %181 = vector.extract_strided_slice %24 {offsets = [24, 0], sizes = [8, 32], strides = [1, 1]} : vector<32x32xf32> to vector<8x32xf32>
    %cst_70 = arith.constant dense<0.000000e+00> : vector<8x32xf32>
    %182 = tpu.matmul %180, %181, %cst_70 {dimension_numbers = #tpu.dot_dimension_numbers<[1], [0], [0], [1], [0, 0, 1, 1], [], []>} : vector<8x8xf32>, vector<8x32xf32>, vector<8x32xf32> -> vector<8x32xf32>
    %183 = arith.addf %165, %182 : vector<8x32xf32>
    %184 = vector.broadcast %25 : vector<1x32xf32> to vector<8x32xf32>
    %185 = arith.addf %183, %184 : vector<8x32xf32>
    %c8 = arith.constant 8 : index
    %c0_71 = arith.constant 0 : index
    %186 = vector.load %arg8[%c8, %c0_71] : memref<16x32xf32, #tpu.memory_space<vmem>>, vector<8x32xf32>
    tpu.vector_store %arg8[%c8, %c0_71], %185 {strides = array<i32>} : memref<16x32xf32, #tpu.memory_space<vmem>>, vector<8x32xf32>,
    return
  }
}

</mosaic_0001>

<bundles_post_ra>
// kernel: tpu_custom_call.1
= control target key start
LH: loop header
LB: loop body
LE: loop exit
PB: predicated region body
PF: predicated region fallthrough
CT: control target
= control target key end

     0   :  { %13 = vsyncpa [#allocation3], 0  ;;  %s3096_s0 = inlined_call_operand.hbm [shape: f32[16,32], index: 0, kind: input, shape index: {}]   ;;  %s3097_s1 = inlined_call_operand.hbm [shape: f32[16,32], index: 1, kind: input, shape index: {}]   ;;  %s3098_s2 = inlined_call_operand.hbm [shape: f32[16,32], index: 2, kind: input, shape index: {}]   ;;  %s3099_s3 = inlined_call_operand.vmem [shape: f32[2,8], index: 3, kind: input, shape index: {}]   ;;  %s3100_s4 = inlined_call_operand.hbm [shape: f32[3,32,32], index: 4, kind: input, shape index: {}]   ;;  %s3101_s5 = inlined_call_operand.vmem [shape: f32[3,1,32], index: 5, kind: input, shape index: {}]   ;;  %s3102_s6 = inlined_call_operand.hbm [shape: f32[32,32], index: 6, kind: input, shape index: {}]   ;;  %s3103_s7 = inlined_call_operand.vmem [shape: f32[1,32], index: 7, kind: input, shape index: {}]   ;;  %s3104_s8 = inlined_call_operand.hbm [shape: f32[16,32], index: 8, kind: output, shape index: {}]  }
   0x1   :  { %14 = vsyncpa [#allocation6], 0 }
   0x2   :  { %15 = vsyncpa [#allocation9], 0 }
   0x3   :  { %16 = vsyncpa [#allocation4], 0  ;;  %s2765_s27 = smov [#allocation5]   ;;  %s2766_s29 = smov [#allocation8]  }
   0x4   :  { %s34_s28 = sshll.u32 %s2765_s27, 4  ;;  %s60_s30 = sshll.u32 %s2766_s29, 4  ;;  %s35_s28 = int_to_ptr.vmem [resolvable:$true] %s34_s28  ;;  %s61_s30 = int_to_ptr.vmem [resolvable:$true] %s60_s30 }
   0x5   :  { %s2645_s9 = scalar_lea.vmem %s35_s28, 256  ;;  %p2650_p1 = scmp.lt.s32.totalorder %s35_s28, %s35_s28 }
   0x6   :  { %p2646_p0 = scmp.ne.s32.totalorder %s35_s28, %s2645_s9  ;;  %p2651_p2 = scmp.lt.s32.totalorder %s2645_s9, %s2645_s9 }
   0x8   :  { %p2652_p3 = por %p2651_p2, %p2650_p1 }
   0xa   :  { %p2653_p4 = pnand %p2652_p3, %p2646_p0 }
   0xc   :  { %2656 = shalt.err (!%p2653_p4)
}
   0xd   :  { %s2767_s10 = smov 128   ;;  %s2768_s11 = smov 8  }
   0xe   :  { %40 = dma.hbm_to_vmem [thread:$0]  %s3097_s1, 256, %s35_s28, [#allocation6], %s2767_s10, %s2767_s10, %s2768_s11  }
   0xf   :  { %s2665_s14 = scalar_lea.vmem %s61_s30, 1536  ;;  %p2670_p6 = scmp.lt.s32.totalorder %s61_s30, %s61_s30 }
  0x10   :  { %p2666_p5 = scmp.ne.s32.totalorder %s61_s30, %s2665_s14  ;;  %p2671_p7 = scmp.lt.s32.totalorder %s2665_s14, %s2665_s14 }
  0x12   :  { %p2672_p8 = por %p2671_p7, %p2670_p6 }
  0x14   :  { %p2673_p9 = pnand %p2672_p8, %p2666_p5 }
  0x16   :  { %2676 = shalt.err (!%p2673_p9)
}
  0x17   :  { %66 = dma.hbm_to_vmem [thread:$0]  %s3100_s4, 1536, %s61_s30, [#allocation9], %s2767_s10, %s2767_s10, %s2768_s11  }
  0x18   :  { %s2769_s17 = smov [#allocation2]   ;;  %s2770_s19 = smov [#allocation7]  }
  0x19   :  { %s22_s18 = sshll.u32 %s2769_s17, 4  ;;  %s46_s20 = sshll.u32 %s2770_s19, 4  ;;  %s23_s18 = int_to_ptr.vmem [resolvable:$true] %s22_s18  ;;  %s47_s20 = int_to_ptr.vmem [resolvable:$true] %s46_s20 }
  0x1a   :  { %s2685_s1 = scalar_lea.vmem %s23_s18, 256  ;;  %p2690_p11 = scmp.lt.s32.totalorder %s23_s18, %s23_s18 }
  0x1b   :  { %p2686_p10 = scmp.ne.s32.totalorder %s23_s18, %s2685_s1  ;;  %p2691_p12 = scmp.lt.s32.totalorder %s2685_s1, %s2685_s1 }
  0x1d   :  { %p2692_p13 = por %p2691_p12, %p2690_p11 }
  0x1f   :  { %p2693_p0 = pnand %p2692_p13, %p2686_p10 }
  0x21   :  { %2696 = shalt.err (!%p2693_p0)
}
  0x22   :  { %28 = dma.hbm_to_vmem [thread:$0]  %s3096_s0, 256, %s23_s18, [#allocation3], %s2767_s10, %s2767_s10, %s2768_s11  }
  0x23   :  { %s2705_s4 = scalar_lea.vmem %s47_s20, 256  ;;  %p2710_p2 = scmp.lt.s32.totalorder %s47_s20, %s47_s20 }
  0x24   :  { %p2706_p1 = scmp.ne.s32.totalorder %s47_s20, %s2705_s4  ;;  %p2711_p3 = scmp.lt.s32.totalorder %s2705_s4, %s2705_s4 }
  0x26   :  { %p2712_p4 = por %p2711_p3, %p2710_p2 }
  0x28   :  { %p2713_p5 = pnand %p2712_p4, %p2706_p1 }
  0x2a   :  { %2716 = shalt.err (!%p2713_p5)
}
  0x2b   :  { %52 = dma.hbm_to_vmem [thread:$0]  %s3098_s2, 256, %s47_s20, [#allocation6], %s2767_s10, %s2767_s10, %s2768_s11  }
  0x2c   :  { %s2771_s25 = smov [#allocation10]  }
  0x2d   :  { %s74_s26 = sshll.u32 %s2771_s25, 4  ;;  %s75_s26 = int_to_ptr.vmem [resolvable:$true] %s74_s26 }
  0x2e   :  { %s2725_s27 = scalar_lea.vmem %s75_s26, 512  ;;  %p2730_p7 = scmp.lt.s32.totalorder %s75_s26, %s75_s26 }
  0x2f   :  { %p2726_p6 = scmp.ne.s32.totalorder %s75_s26, %s2725_s27  ;;  %p2731_p8 = scmp.lt.s32.totalorder %s2725_s27, %s2725_s27 }
  0x31   :  { %p2732_p9 = por %p2731_p8, %p2730_p7 }
  0x33   :  { %p2733_p10 = pnand %p2732_p9, %p2726_p6 }
  0x35   :  { %2736 = shalt.err (!%p2733_p10)
}
  0x36   :  { %80 = dma.hbm_to_vmem [thread:$0]  %s3102_s6, 512, %s75_s26, [#allocation9], %s2767_s10, %s2767_s10, %s2768_s11  }
  0x37   :  { %2757 = dma.done.wait [#allocation3], 256  }
  0x38   :  { %2758 = vsyncadd [#allocation3], 4294967040 }
  0x39   :  { %2759 = dma.done.wait [#allocation6], 512  }
  0x3a   :  { %2760 = vsyncadd [#allocation6], 4294966784 }
  0x3b   :  { %2761 = dma.done.wait [#allocation9], 2048  }
  0x3c   :  { %2762 = vsyncadd [#allocation9], 4294965248  ;;  %v201_v0 = vld [vmem:[#allocation8 + $0x38] sm:$0xff]  ;;  %v200_v2 = vld [vmem:[#allocation8 + $0x30] sm:$0xff]  ;;  %vm115_vm0 = vcmask 261120   ;;  %v2772_v12 = vmov 0.0   ;;  %v391_v36 = vlaneseq }
  0x3d   :  { %v107_v1 = vld [vmem:[#allocation8 + $0x18] sm:$0xff]  ;;  %2450 = vmatprep.subr.mxu1 %v201_v0  ;;  %v106_v3 = vld [vmem:[#allocation8 + $0x10] sm:$0xff]  ;;  %v199_v4 = vld [vmem:[#allocation8 + $0x28] sm:$0xff]  ;;  %vm2773_vm1 = vmmov 0   ;;  %vm395_vm2 = vcmask 64512   ;;  %s2774_s9 = smov 120  }
  0x3e   :  { %2439 = vmatprep.subr.mxu0 %v107_v1  ;;  %2451 = vmatpush3.msra.mxu1 %v201_v0  ;;  %v105_v5 = vld [vmem:[#allocation8 + $0x8] sm:$0xff]  ;;  %v198_v6 = vld [vmem:[#allocation8 + $0x20] sm:$0xff]  ;;  %v98_v10 = vld [vmem:[#allocation2] sm:$0xff]  ;;  %v2904_v37 = vshrl.u32 %v391_v36, 7  ;;  %s2776_s15 = smov 104  }
  0x3f   :  { %2440 = vmatpush3.msra.mxu0 %v107_v1  ;;  %2452 = vmatprep.subr.mxu1 %v200_v2  ;;  %v100_v7 = vld [vmem:[#allocation5] sm:$0xff]  ;;  %v101_v9 = vld [vmem:[#allocation5 + $0x8] sm:$0xff]  ;;  %v99_v11 = vld [vmem:[#allocation2 + $0x8] sm:$0xff] }
  0x40   :  { %2441 = vmatprep.subr.mxu0 %v106_v3  ;;  %2453 = vmatpush3.msra.mxu1 %v200_v2  ;;  %v104_v8 = vld [vmem:[#allocation8] sm:$0xff]  ;;  %v295_v13 = vld [vmem:[#allocation8 + $0x58] sm:$0xff]  ;;  %v294_v14 = vld [vmem:[#allocation8 + $0x50] sm:$0xff]  ;;  %v393_v38 = vsub.s32 0, %v2904_v37 }
  0x41   :  { %2442 = vmatpush3.msra.mxu0 %v106_v3  ;;  %2454 = vmatprep.subr.mxu1 %v199_v4  ;;  %v102_v15 = vld [vmem:[#allocation7] sm:$0xff]  ;;  %v293_v16 = vld [vmem:[#allocation8 + $0x48] sm:$0xff]  ;;  %v292_v17 = vld [vmem:[#allocation8 + $0x40] sm:$0xff] }
  0x42   :  { %2443 = vmatprep.subr.mxu0 %v105_v5  ;;  %2455 = vmatpush3.msra.mxu1 %v199_v4  ;;  %v103_v18 = vld [vmem:[#allocation7 + $0x8] sm:$0xff]  ;;  %v2333_v19 = vld [vmem:[%s3101_s5 + $0x1] ss:$0 sm:$0xff]  ;;  %v2329_v21 = vld [vmem:[%s3101_s5] ss:$0 sm:$0xff] }
  0x43   :  { %2444 = vmatpush3.msra.mxu0 %v105_v5  ;;  %2456 = vmatprep.subr.mxu1 %v198_v6  ;;  %v2337_v29 = vld [vmem:[%s3101_s5 + $0x2] ss:$0 sm:$0xff]  ;;  %v2910_v39 = vld [vmem:[%s3099_s3] sm:$0x3]  ;;  %s2775_s3 = smov 112   ;;  %v2932_v62 = vld [vmem:[#allocation10 + $0x8] sm:$0xff] }
  0x44   :  { %2458 = vmatprep.mubr.msk.f32.mxu1 %vm115_vm0, %v100_v7  ;;  %2457 = vmatpush3.msra.mxu1 %v198_v6  ;;  %v2913_v40 = vrot.slane %v2910_v39, %v393_v38  ;;  %v2937_v3 = vld [vmem:[#allocation10] sm:$0xff] }
  0x45   :  { %2445 = vmatprep.subr.mxu0 %v104_v8  ;;  %2459 = vmatmul.mubr.msk.f32.vlgmr.msra.gmra.mxu1 %vm115_vm0, %v101_v9 }
  0x46   :  { %2446 = vmatpush3.msra.mxu0 %v104_v8  ;;  %2447 = vmatprep.mubr.msk.f32.mxu0 %vm115_vm0, %v98_v10 }
  0x47   :  { %2448 = vmatmul.mubr.msk.f32.vlgmr.msra.gmra.mxu0 %vm115_vm0, %v99_v11  ;;  %2472 = vmatprep.subr.mxu1 %v2772_v12 }
  0x48   :  { %2474 = vmatprep.mubr.msk.f32.mxu1 %vm2773_vm1, %v2772_v12  ;;  %2461 = vmatprep.subr.mxu0 %v295_v13 }
  0x49   :  { %2462 = vmatpush3.msra.mxu0 %v295_v13  ;;  %2469 = vmatprep.mubr.msk.f32.mxu0 %vm115_vm0, %v102_v15 }
  0x4a   :  { %2463 = vmatprep.subr.mxu0 %v294_v14 }
  0x4b   :  { %2464 = vmatpush3.msra.mxu0 %v294_v14 }
  0x4c   :  { %2465 = vmatprep.subr.mxu0 %v293_v16 }
  0x4d   :  { %2466 = vmatpush3.msra.mxu0 %v293_v16 }
  0x4e   :  { %2467 = vmatprep.subr.mxu0 %v292_v17 }
  0x4f   :  { %2468 = vmatpush3.msra.mxu0 %v292_v17 }
  0x50   :  { %2470 = vmatmul.mubr.msk.f32.vlgmr.msra.gmra.mxu0 %vm115_vm0, %v103_v18  ;;  %2482 = vmatprep.subr.mxu0 %v2772_v12 }
  0x51   :  { %2484 = vmatprep.mubr.msk.f32.mxu0 %vm2773_vm1, %v2772_v12 }
 0x105   :  { %v2460_v20 = vpop.f32.mrf.mxu1 }
 0x106   :  { %v2871_v22 = vadd.f32 %v2460_v20, %v2333_v19 }
 0x107   :  { %v2449_v23 = vpop.f32.mrf.mxu0  ;;  %v282_v24 = vpop.f32.mrf.mxu1 }
 0x108   :  { %v2873_v25 = vadd.f32 %v2449_v23, %v2329_v21  ;;  %v2875_v26 = vadd.f32 %v2333_v19, %v282_v24 }
 0x109   :  { %v188_v27 = vpop.f32.mrf.mxu0 }
 0x10a   :  { %v2877_v28 = vadd.f32 %v2329_v21, %v188_v27  ;;  %558 = vrot.lane.b32.xlu0 %v2875_v26, %s2774_s9  ;;  %2473 = vmatpush3.xpose.msk.msra.mxu1 %vm395_vm2, %v2875_v26 }
 0x10b   :  { %2477 = vmatprep.subr.mxu1 %v2772_v12 }
 0x10d   :  { %2475 = vmatmul.mubr.msk.f32.vlgmr.msra.gmra.mxu1 %vm395_vm2, %v2877_v28 }
 0x10e   :  { %556 = vrot.lane.b32.xlu0 %v2877_v28, %s2774_s9  ;;  %2479 = vmatprep.mubr.msk.f32.mxu1 %vm2773_vm1, %v2772_v12 }
 0x110   :  { %v2471_v30 = vpop.f32.mrf.mxu0 }
 0x111   :  { %v2893_v31 = vadd.f32 %v2471_v30, %v2337_v29 }
 0x112   :  { %v376_v32 = vpop.f32.mrf.mxu0 }
 0x113   :  { %v2895_v33 = vadd.f32 %v2337_v29, %v376_v32  ;;  %v2967_v29 = vld [vmem:[#allocation10 + $0x10] sm:$0xff] }
 0x115   :  { %2478 = vmatpush3.msra.mxu1 %v2895_v33 }
 0x116   :  { %2487 = vmatprep.subr.mxu1 %v2772_v12 }
 0x17c   :  { %v559_v34 = vpop.permute.xlu0 %558 }
 0x17d   :  { %2483 = vmatpush3.xpose.msk.msra.mxu0 %vm395_vm2, %v559_v34 }
 0x17e   :  { %2492 = vmatprep.subr.mxu0 %v2772_v12 }
 0x180   :  { %v557_v35 = vpop.permute.xlu0 %556 }
 0x181   :  { %2485 = vmatmul.mubr.msk.f32.vlgmr.msra.gmra.mxu0 %vm395_vm2, %v557_v35 }
 0x182   :  { %2494 = vmatprep.mubr.msk.f32.mxu0 %vm2773_vm1, %v2772_v12  ;;  %2493 = vmatpush3.msra.mxu0 %v2932_v62 }
 0x183   :  { %2502 = vmatprep.subr.mxu0 %v2772_v12 }
 0x1cd   :  { %v468_v41 = vpop.f32.mrf.mxu1 }
 0x1ce   :  { %v469_v42 = vadd.f32 %v468_v41, %v2913_v40 }
 0x1cf   :  { %v2476_v43 = vpop.f32.mrf.mxu1 }
 0x1d0   :  { %v472_v44 = vsel %vm395_vm2, %v469_v42, -inf }
 0x1d1   :  { %473 = vmax.xlane.f32.xlu1 %v472_v44 }
 0x241   :  { %v630_v45 = vpop.f32.mrf.mxu0 }
 0x242   :  { %v631_v46 = vadd.f32 %v630_v45, %v2913_v40 }
 0x243   :  { %v2486_v47 = vpop.f32.mrf.mxu0 }
 0x244   :  { %v634_v48 = vsel %vm395_vm2, %v631_v46, -inf }
 0x245   :  { %635 = vmax.xlane.f32.xlu1 %v634_v48 }
 0x25a   :  { %v474_v49 = vpop.xlane.xlu1 %473 }
 0x25b   :  { %v475_v50 = vsub.f32 %v469_v42, %v474_v49 }
 0x25d   :  { %v476_v51 = vmul.f32 1.442695, %v475_v50 }
 0x25f   :  { %2605 = vpow2.f32 %v476_v51 }
 0x26c   :  { %v2606_v52 = vpop.eup %2605 }
 0x26d   :  { %v478_v53 = vsel %vm395_vm2, %v2606_v52, 0.0 }
 0x26e   :  { %479 = vadd.xlane.f32.xlu0 %v478_v53 }
 0x284   :  { %957 = vrot.lane.b32.xlu0 %v2895_v33, %s2775_s3 }
 0x2ce   :  { %v636_v54 = vpop.xlane.xlu1 %635 }
 0x2cf   :  { %v637_v55 = vsub.f32 %v631_v46, %v636_v54 }
 0x2d1   :  { %v638_v56 = vmul.f32 1.442695, %v637_v55 }
 0x2d3   :  { %2607 = vpow2.f32 %v638_v56 }
 0x2e0   :  { %v2608_v57 = vpop.eup %2607 }
 0x2e1   :  { %v640_v58 = vsel %vm395_vm2, %v2608_v57, 0.0 }
 0x2e2   :  { %641 = vadd.xlane.f32.xlu1 %v640_v58  ;;  %v1356_v58 = vsub.s32 1, %v2904_v37 }
 0x2f3   :  { %646 = vrot.lane.b32.xlu1 %v2895_v33, %s2774_s9 }
 0x2f7   :  { %v480_v59 = vpop.xlane.xlu0 %479  ;;  %870 = vrot.lane.b32.xlu1 %v2875_v26, %s2775_s3 }
 0x2f8   :  { %2609 = vrcp.f32 %v480_v59 }
 0x2fb   :  { %868 = vrot.lane.b32.xlu1 %v2877_v28, %s2775_s3  ;;  %v958_v5 = vpop.permute.xlu0 %957 }
 0x305   :  { %v2610_v60 = vpop.eup %2609 }
 0x306   :  { %v482_v61 = vmul.f32 %v2610_v60, %v2606_v52  ;;  %v3012_v60 = vrot.slane %v2910_v39, %v1356_v58 }
 0x308   :  { %2480 = vmatmul.mubr.msk.f32.vlgmr.msra.gmra.mxu1 %vm395_vm2, %v482_v61 }
 0x309   :  { %2489 = vmatprep.mubr.msk.f32.mxu1 %vm2773_vm1, %v2772_v12 }
 0x36b   :  { %v642_v63 = vpop.xlane.xlu1 %641 }
 0x36c   :  { %2611 = vrcp.f32 %v642_v63 }
 0x36f   :  { %v647_v0 = vpop.permute.xlu1 %646 }
 0x370   :  { %2488 = vmatpush3.msra.mxu1 %v647_v0 }
 0x371   :  { %2497 = vmatprep.subr.mxu1 %v2772_v12 }
 0x373   :  { %v871_v7 = vpop.permute.xlu1 %870 }
 0x377   :  { %v869_v10 = vpop.permute.xlu1 %868 }
 0x379   :  { %v2612_v1 = vpop.eup %2611 }
 0x37a   :  { %v644_v2 = vmul.f32 %v2612_v1, %v2608_v57 }
 0x37c   :  { %2490 = vmatmul.mubr.msk.f32.vlgmr.msra.gmra.mxu1 %vm395_vm2, %v644_v2 }
 0x37d   :  { %2498 = vmatpush3.msra.mxu1 %v2937_v3  ;;  %2499 = vmatprep.mubr.msk.f32.mxu1 %vm2773_vm1, %v2772_v12 }
 0x37e   :  { %2507 = vmatprep.subr.mxu1 %v2772_v12 }
 0x3c8   :  { %v552_v4 = vpop.f32.mrf.mxu1 }
 0x3c9   :  { %2500 = vmatmul.mubr.msk.f32.vlgmr.msra.gmra.mxu1 %vm395_vm2, %v552_v4 }
 0x3ca   :  { %2508 = vmatpush3.msra.mxu1 %v958_v5  ;;  %v2481_v6 = vpop.f32.mrf.mxu1  ;;  %2509 = vmatprep.mubr.msk.f32.mxu1 %vm2773_vm1, %v2772_v12 }
 0x3cb   :  { %2517 = vmatprep.subr.mxu1 %v2772_v12 }
 0x43c   :  { %v718_v8 = vpop.f32.mrf.mxu1 }
 0x43d   :  { %2495 = vmatmul.mubr.msk.f32.vlgmr.msra.gmra.mxu0 %vm395_vm2, %v718_v8 }
 0x43e   :  { %2503 = vmatpush3.xpose.msk.msra.mxu0 %vm395_vm2, %v871_v7  ;;  %v2491_v9 = vpop.f32.mrf.mxu1  ;;  %2504 = vmatprep.mubr.msk.f32.mxu0 %vm2773_vm1, %v2772_v12 }
 0x43f   :  { %2512 = vmatprep.subr.mxu0 %v2772_v12 }
 0x441   :  { %2505 = vmatmul.mubr.msk.f32.vlgmr.msra.gmra.mxu0 %vm395_vm2, %v869_v10 }
 0x442   :  { %2514 = vmatprep.mubr.msk.f32.mxu0 %vm2773_vm1, %v2772_v12  ;;  %2513 = vmatpush3.msra.mxu0 %v2967_v29 }
 0x443   :  { %2522 = vmatprep.subr.mxu0 %v2772_v12 }
 0x489   :  { %v864_v11 = vpop.f32.mrf.mxu1 }
 0x48b   :  { %v2501_v13 = vpop.f32.mrf.mxu1 }
 0x4fd   :  { %v791_v14 = vpop.f32.mrf.mxu0 }
 0x4fe   :  { %v865_v49 = vadd.f32 %v864_v11, %v791_v14 }
 0x4ff   :  { %v2496_v15 = vpop.f32.mrf.mxu0 }
 0x501   :  { %v942_v16 = vpop.f32.mrf.mxu0 }
 0x502   :  { %v943_v17 = vadd.f32 %v942_v16, %v2913_v40  ;;  %v3031_v16 = vld [vmem:[%s3103_s7] ss:$0 sm:$0xff]  ;;  %s2777_s7 = smov [#allocation11]  }
 0x503   :  { %v2506_v18 = vpop.f32.mrf.mxu0  ;;  %s2315_s18 = sshll.u32 %s2777_s7, 4  ;;  %s2316_s18 = int_to_ptr.vmem [resolvable:$true] %s2315_s18 }
 0x504   :  { %v946_v19 = vsel %vm395_vm2, %v943_v17, -inf  ;;  %s2737_s19 = scalar_lea.vmem %s2316_s18, 256  ;;  %p2742_p12 = scmp.lt.s32.totalorder %s2316_s18, %s2316_s18 }
 0x505   :  { %947 = vmax.xlane.f32.xlu1 %v946_v19  ;;  %p2738_p11 = scmp.ne.s32.totalorder %s2316_s18, %s2737_s19  ;;  %p2743_p13 = scmp.lt.s32.totalorder %s2737_s19, %s2737_s19 }
 0x507   :  { %p2744_p0 = por %p2743_p13, %p2742_p12 }
 0x509   :  { %p2745_p1 = pnand %p2744_p0, %p2738_p11 }
 0x516   :  { %1196 = vrot.lane.b32.xlu1 %v2895_v33, %s2776_s15 }
 0x51a   :  { %1520 = vrot.lane.b32.xlu1 %v2871_v22, %s2774_s9 }
 0x58e   :  { %v948_v20 = vpop.xlane.xlu1 %947 }
 0x58f   :  { %v949_v21 = vsub.f32 %v943_v17, %v948_v20 }
 0x591   :  { %v950_v23 = vmul.f32 1.442695, %v949_v21 }
 0x592   :  { %v1197_v35 = vpop.permute.xlu1 %1196 }
 0x593   :  { %2613 = vpow2.f32 %v950_v23 }
 0x596   :  { %v1521_v53 = vpop.permute.xlu1 %1520 }
 0x5a0   :  { %v2614_v24 = vpop.eup %2613 }
 0x5a1   :  { %v952_v27 = vsel %vm395_vm2, %v2614_v24, 0.0 }
 0x5a2   :  { %953 = vadd.xlane.f32.xlu0 %v952_v27 }
 0x5b8   :  { %1109 = vrot.lane.b32.xlu0 %v2875_v26, %s2776_s15 }
 0x5bc   :  { %1107 = vrot.lane.b32.xlu0 %v2877_v28, %s2776_s15 }
 0x62b   :  { %v954_v30 = vpop.xlane.xlu0 %953 }
 0x62c   :  { %2615 = vrcp.f32 %v954_v30 }
 0x62f   :  { %v1110_v33 = vpop.permute.xlu0 %1109 }
 0x633   :  { %v1108_v26 = vpop.permute.xlu0 %1107 }
 0x639   :  { %v2616_v32 = vpop.eup %2615 }
 0x63a   :  { %v956_v34 = vmul.f32 %v2616_v32, %v2614_v24 }
 0x63c   :  { %2510 = vmatmul.mubr.msk.f32.vlgmr.msra.gmra.mxu1 %vm395_vm2, %v956_v34 }
 0x63d   :  { %2518 = vmatpush3.xpose.msk.msra.mxu1 %vm395_vm2, %v1110_v33  ;;  %2519 = vmatprep.mubr.msk.f32.mxu1 %vm2773_vm1, %v2772_v12 }
 0x63e   :  { %2527 = vmatprep.subr.mxu1 %v2772_v12 }
 0x640   :  { %2520 = vmatmul.mubr.msk.f32.vlgmr.msra.gmra.mxu1 %vm395_vm2, %v1108_v26 }
 0x641   :  { %2529 = vmatprep.mubr.msk.f32.mxu1 %vm2773_vm1, %v2772_v12 }
 0x6fc   :  { %v1029_v28 = vpop.f32.mrf.mxu1 }
 0x6fd   :  { %2515 = vmatmul.mubr.msk.f32.vlgmr.msra.gmra.mxu0 %vm395_vm2, %v1029_v28 }
 0x6fe   :  { %2523 = vmatpush3.msra.mxu0 %v1197_v35  ;;  %v2511_v36 = vpop.f32.mrf.mxu1  ;;  %2524 = vmatprep.mubr.msk.f32.mxu0 %vm2773_vm1, %v2772_v12 }
 0x6ff   :  { %2532 = vmatprep.subr.mxu0 %v2772_v12 }
 0x700   :  { %v1181_v38 = vpop.f32.mrf.mxu1 }
 0x701   :  { %v1182_v41 = vadd.f32 %v1181_v38, %v2913_v40  ;;  %v2988_v40 = vld [vmem:[#allocation10 + $0x18] sm:$0xff] }
 0x702   :  { %v2521_v42 = vpop.f32.mrf.mxu1  ;;  %2528 = vmatpush3.msra.mxu1 %v2988_v40 }
 0x703   :  { %v1185_v43 = vsel %vm395_vm2, %v1182_v41, -inf  ;;  %2537 = vmatprep.subr.mxu1 %v2772_v12 }
 0x704   :  { %1186 = vmax.xlane.f32.xlu0 %v1185_v43 }
 0x78d   :  { %v1187_v44 = vpop.xlane.xlu0 %1186 }
 0x78e   :  { %v1188_v45 = vsub.f32 %v1182_v41, %v1187_v44 }
 0x790   :  { %v1189_v46 = vmul.f32 1.442695, %v1188_v45 }
 0x792   :  { %2617 = vpow2.f32 %v1189_v46 }
 0x79f   :  { %v2618_v47 = vpop.eup %2617 }
 0x7a0   :  { %v1191_v48 = vsel %vm395_vm2, %v2618_v47, 0.0 }
 0x7a1   :  { %1192 = vadd.xlane.f32.xlu1 %v1191_v48 }
 0x7b2   :  { %1518 = vrot.lane.b32.xlu1 %v2873_v25, %s2774_s9 }
 0x7bd   :  { %v1102_v50 = vpop.f32.mrf.mxu0 }
 0x7be   :  { %v1106_v51 = vadd.f32 %v1102_v50, %v865_v49 }
 0x7bf   :  { %v2516_v52 = vpop.f32.mrf.mxu0 }
 0x82a   :  { %v1193_v54 = vpop.xlane.xlu1 %1192 }
 0x82b   :  { %2619 = vrcp.f32 %v1193_v54 }
 0x82e   :  { %v1519_v57 = vpop.permute.xlu1 %1518 }
 0x838   :  { %v2620_v55 = vpop.eup %2619 }
 0x839   :  { %v1195_v56 = vmul.f32 %v2620_v55, %v2618_v47 }
 0x83b   :  { %2525 = vmatmul.mubr.msk.f32.vlgmr.msra.gmra.mxu0 %vm395_vm2, %v1195_v56 }
 0x83c   :  { %2533 = vmatpush3.xpose.msk.msra.mxu0 %vm395_vm2, %v2871_v22  ;;  %2534 = vmatprep.mubr.msk.f32.mxu0 %vm2773_vm1, %v2772_v12 }
 0x83d   :  { %2542 = vmatprep.subr.mxu0 %v2772_v12 }
 0x83f   :  { %2535 = vmatmul.mubr.msk.f32.vlgmr.msra.gmra.mxu0 %vm395_vm2, %v2873_v25 }
 0x840   :  { %2543 = vmatpush3.xpose.msk.msra.mxu0 %vm395_vm2, %v1521_v53  ;;  %2544 = vmatprep.mubr.msk.f32.mxu0 %vm2773_vm1, %v2772_v12 }
 0x841   :  { %2552 = vmatprep.subr.mxu0 %v2772_v12 }
 0x843   :  { %2545 = vmatmul.mubr.msk.f32.vlgmr.msra.gmra.mxu0 %vm395_vm2, %v1519_v57 }
 0x844   :  { %2553 = vmatpush3.msra.mxu0 %v2932_v62  ;;  %2554 = vmatprep.mubr.msk.f32.mxu0 %vm2773_vm1, %v2772_v12 }
 0x845   :  { %2562 = vmatprep.subr.mxu0 %v2772_v12 }
 0x8fb   :  { %v1268_v59 = vpop.f32.mrf.mxu0 }
 0x8fc   :  { %2530 = vmatmul.mubr.msk.f32.vlgmr.msra.gmra.mxu1 %vm395_vm2, %v1268_v59 }
 0x8fd   :  { %2538 = vmatpush3.msra.mxu1 %v2893_v31  ;;  %v2526_v61 = vpop.f32.mrf.mxu0  ;;  %2539 = vmatprep.mubr.msk.f32.mxu1 %vm2773_vm1, %v2772_v12 }
 0x8fe   :  { %2547 = vmatprep.subr.mxu1 %v2772_v12 }
 0x8ff   :  { %v1430_v62 = vpop.f32.mrf.mxu0 }
 0x900   :  { %v1431_v63 = vadd.f32 %v1430_v62, %v3012_v60 }
 0x901   :  { %v2536_v0 = vpop.f32.mrf.mxu0 }
 0x902   :  { %v1434_v37 = vsel %vm395_vm2, %v1431_v63, -inf }
 0x903   :  { %1435 = vmax.xlane.f32.xlu1 %v1434_v37  ;;  %v1592_v1 = vpop.f32.mrf.mxu0 }
 0x904   :  { %v1593_v2 = vadd.f32 %v1592_v1, %v3012_v60 }
 0x905   :  { %v2546_v39 = vpop.f32.mrf.mxu0 }
 0x906   :  { %v1596_v4 = vsel %vm395_vm2, %v1593_v2, -inf }
 0x907   :  { %1597 = vmax.xlane.f32.xlu0 %v1596_v4 }
 0x914   :  { %1830 = vrot.lane.b32.xlu1 %v2873_v25, %s2775_s3 }
 0x98c   :  { %v1436_v5 = vpop.xlane.xlu1 %1435 }
 0x98d   :  { %v1437_v6 = vsub.f32 %v1431_v63, %v1436_v5 }
 0x98f   :  { %v1438_v7 = vmul.f32 1.442695, %v1437_v6 }
 0x990   :  { %v1598_v8 = vpop.xlane.xlu0 %1597 }
 0x991   :  { %2621 = vpow2.f32 %v1438_v7  ;;  %v1599_v9 = vsub.f32 %v1593_v2, %v1598_v8 }
 0x993   :  { %v1600_v10 = vmul.f32 1.442695, %v1599_v9 }
 0x995   :  { %2623 = vpow2.f32 %v1600_v10 }
 0x99e   :  { %v2622_v11 = vpop.eup %2621 }
 0x99f   :  { %v1440_v13 = vsel %vm395_vm2, %v2622_v11, 0.0 }
 0x9a0   :  { %1441 = vadd.xlane.f32.xlu0 %v1440_v13 }
 0x9a2   :  { %v2624_v14 = vpop.eup %2623 }
 0x9a3   :  { %v1602_v15 = vsel %vm395_vm2, %v2624_v14, 0.0 }
 0x9a4   :  { %1603 = vadd.xlane.f32.xlu0 %v1602_v15 }
 0x9ba   :  { %1608 = vrot.lane.b32.xlu0 %v2893_v31, %s2774_s9 }
 0x9bc   :  { %v1341_v17 = vpop.f32.mrf.mxu1 }
 0x9bd   :  { %v1345_v18 = vadd.f32 %v1341_v17, %v1106_v51 }
 0x9be   :  { %1832 = vrot.lane.b32.xlu0 %v2871_v22, %s2775_s3  ;;  %v2531_v19 = vpop.f32.mrf.mxu1 }
 0x9bf   :  { %v1352_v20 = vadd.f32 %v3031_v16, %v1345_v18 }
 0x9c1   :  { %1353 = vst.msk [vmem:[#allocation11] sm:$0xff] %vm115_vm0, %v1352_v20 }
 0xa29   :  { %v1442_v21 = vpop.xlane.xlu0 %1441 }
 0xa2a   :  { %2625 = vrcp.f32 %v1442_v21 }
 0xa2d   :  { %v1604_v23 = vpop.xlane.xlu0 %1603 }
 0xa2e   :  { %2627 = vrcp.f32 %v1604_v23 }
 0xa31   :  { %v1609_v30 = vpop.permute.xlu0 %1608 }
 0xa35   :  { %v1833_v35 = vpop.permute.xlu0 %1832 }
 0xa37   :  { %v2626_v24 = vpop.eup %2625 }
 0xa38   :  { %v1444_v27 = vmul.f32 %v2626_v24, %v2622_v11 }
 0xa3a   :  { %2540 = vmatmul.mubr.msk.f32.vlgmr.msra.gmra.mxu1 %vm395_vm2, %v1444_v27 }
 0xa3b   :  { %v2628_v32 = vpop.eup %2627  ;;  %2548 = vmatpush3.msra.mxu1 %v1609_v30  ;;  %2549 = vmatprep.mubr.msk.f32.mxu1 %vm2773_vm1, %v2772_v12 }
 0xa3c   :  { %v1606_v33 = vmul.f32 %v2628_v32, %v2624_v14  ;;  %2557 = vmatprep.subr.mxu1 %v2772_v12 }
 0xa3e   :  { %2550 = vmatmul.mubr.msk.f32.vlgmr.msra.gmra.mxu1 %vm395_vm2, %v1606_v33 }
 0xa3f   :  { %2558 = vmatpush3.msra.mxu1 %v2937_v3  ;;  %2559 = vmatprep.mubr.msk.f32.mxu1 %vm2773_vm1, %v2772_v12  ;;  %v1831_v3 = vpop.permute.xlu1 %1830 }
 0xa40   :  { %2567 = vmatprep.subr.mxu1 %v2772_v12 }
 0xafa   :  { %v1514_v34 = vpop.f32.mrf.mxu1 }
 0xafb   :  { %2560 = vmatmul.mubr.msk.f32.vlgmr.msra.gmra.mxu1 %vm395_vm2, %v1514_v34 }
 0xafc   :  { %v2541_v26 = vpop.f32.mrf.mxu1  ;;  %2569 = vmatprep.mubr.msk.f32.mxu1 %vm2773_vm1, %v2772_v12 }
 0xafe   :  { %v1680_v28 = vpop.f32.mrf.mxu1 }
 0xaff   :  { %2555 = vmatmul.mubr.msk.f32.vlgmr.msra.gmra.mxu0 %vm395_vm2, %v1680_v28 }
 0xb00   :  { %2563 = vmatpush3.xpose.msk.msra.mxu0 %vm395_vm2, %v1833_v35  ;;  %v2551_v36 = vpop.f32.mrf.mxu1  ;;  %2564 = vmatprep.mubr.msk.f32.mxu0 %vm2773_vm1, %v2772_v12 }
 0xb01   :  { %2572 = vmatprep.subr.mxu0 %v2772_v12 }
 0xb03   :  { %2565 = vmatmul.mubr.msk.f32.vlgmr.msra.gmra.mxu0 %vm395_vm2, %v1831_v3 }
 0xb04   :  { %2573 = vmatpush3.msra.mxu0 %v2967_v29  ;;  %2574 = vmatprep.mubr.msk.f32.mxu0 %vm2773_vm1, %v2772_v12 }
 0xb05   :  { %2582 = vmatprep.subr.mxu0 %v2772_v12 }
 0xbbb   :  { %v1826_v38 = vpop.f32.mrf.mxu1 }
 0xbbd   :  { %v2561_v41 = vpop.f32.mrf.mxu1 }
 0xbbf   :  { %v1753_v42 = vpop.f32.mrf.mxu0 }
 0xbc0   :  { %v1827_v43 = vadd.f32 %v1826_v38, %v1753_v42 }
 0xbc1   :  { %v2556_v44 = vpop.f32.mrf.mxu0 }
 0xbc3   :  { %v1904_v45 = vpop.f32.mrf.mxu0 }
 0xbc4   :  { %v1905_v46 = vadd.f32 %v1904_v45, %v3012_v60 }
 0xbc5   :  { %v2566_v47 = vpop.f32.mrf.mxu0 }
 0xbc6   :  { %v1908_v48 = vsel %vm395_vm2, %v1905_v46, -inf }
 0xbc7   :  { %1909 = vmax.xlane.f32.xlu0 %v1908_v48 }
 0xbdd   :  { %1919 = vrot.lane.b32.xlu0 %v2893_v31, %s2775_s3 }
 0xbe1   :  { %2069 = vrot.lane.b32.xlu0 %v2873_v25, %s2776_s15 }
 0xc50   :  { %v1910_v29 = vpop.xlane.xlu0 %1909 }
 0xc51   :  { %v1911_v49 = vsub.f32 %v1905_v46, %v1910_v29 }
 0xc53   :  { %v1912_v50 = vmul.f32 1.442695, %v1911_v49 }
 0xc54   :  { %v1920_v51 = vpop.permute.xlu0 %1919 }
 0xc55   :  { %2629 = vpow2.f32 %v1912_v50  ;;  %2568 = vmatpush3.msra.mxu1 %v1920_v51 }
 0xc56   :  { %2577 = vmatprep.subr.mxu1 %v2772_v12 }
 0xc58   :  { %v2070_v57 = vpop.permute.xlu0 %2069 }
 0xc62   :  { %v2630_v52 = vpop.eup %2629 }
 0xc63   :  { %v1914_v53 = vsel %vm395_vm2, %v2630_v52, 0.0 }
 0xc64   :  { %1915 = vadd.xlane.f32.xlu1 %v1914_v53 }
 0xc75   :  { %2071 = vrot.lane.b32.xlu1 %v2871_v22, %s2776_s15 }
 0xced   :  { %v1916_v54 = vpop.xlane.xlu1 %1915 }
 0xcee   :  { %2631 = vrcp.f32 %v1916_v54 }
 0xcf1   :  { %v2072_v25 = vpop.permute.xlu1 %2071 }
 0xcfb   :  { %v2632_v55 = vpop.eup %2631 }
 0xcfc   :  { %v1918_v56 = vmul.f32 %v2632_v55, %v2630_v52 }
 0xcfe   :  { %2570 = vmatmul.mubr.msk.f32.vlgmr.msra.gmra.mxu1 %vm395_vm2, %v1918_v56 }
 0xcff   :  { %2578 = vmatpush3.xpose.msk.msra.mxu1 %vm395_vm2, %v2072_v25  ;;  %2579 = vmatprep.mubr.msk.f32.mxu1 %vm2773_vm1, %v2772_v12 }
 0xd00   :  { %2587 = vmatprep.subr.mxu1 %v2772_v12 }
 0xd02   :  { %2580 = vmatmul.mubr.msk.f32.vlgmr.msra.gmra.mxu1 %vm395_vm2, %v2070_v57 }
 0xd03   :  { %2588 = vmatpush3.msra.mxu1 %v2988_v40  ;;  %2589 = vmatprep.mubr.msk.f32.mxu1 %vm2773_vm1, %v2772_v12 }
 0xdbe   :  { %v1991_v22 = vpop.f32.mrf.mxu1 }
 0xdbf   :  { %2575 = vmatmul.mubr.msk.f32.vlgmr.msra.gmra.mxu0 %vm395_vm2, %v1991_v22 }
 0xdc0   :  { %v2571_v58 = vpop.f32.mrf.mxu1  ;;  %2584 = vmatprep.mubr.msk.f32.mxu0 %vm2773_vm1, %v2772_v12 }
 0xdc2   :  { %v2143_v59 = vpop.f32.mrf.mxu1 }
 0xdc3   :  { %v2144_v61 = vadd.f32 %v2143_v59, %v3012_v60 }
 0xdc4   :  { %v2581_v62 = vpop.f32.mrf.mxu1 }
 0xdc5   :  { %v2147_v63 = vsel %vm395_vm2, %v2144_v61, -inf }
 0xdc6   :  { %2148 = vmax.xlane.f32.xlu0 %v2147_v63 }
 0xddc   :  { %2158 = vrot.lane.b32.xlu0 %v2893_v31, %s2776_s15 }
 0xe4f   :  { %v2149_v40 = vpop.xlane.xlu0 %2148 }
 0xe50   :  { %v2150_v0 = vsub.f32 %v2144_v61, %v2149_v40 }
 0xe52   :  { %v2151_v37 = vmul.f32 1.442695, %v2150_v0 }
 0xe53   :  { %v2159_v1 = vpop.permute.xlu0 %2158 }
 0xe54   :  { %2633 = vpow2.f32 %v2151_v37  ;;  %2583 = vmatpush3.msra.mxu0 %v2159_v1 }
 0xe61   :  { %v2634_v2 = vpop.eup %2633 }
 0xe62   :  { %v2153_v39 = vsel %vm395_vm2, %v2634_v2, 0.0 }
 0xe63   :  { %2154 = vadd.xlane.f32.xlu1 %v2153_v39 }
 0xe7f   :  { %v2064_v12 = vpop.f32.mrf.mxu0 }
 0xe80   :  { %v2068_v4 = vadd.f32 %v2064_v12, %v1827_v43 }
 0xe81   :  { %v2576_v60 = vpop.f32.mrf.mxu0 }
 0xeec   :  { %v2155_v5 = vpop.xlane.xlu1 %2154 }
 0xeed   :  { %2635 = vrcp.f32 %v2155_v5 }
 0xefa   :  { %v2636_v6 = vpop.eup %2635 }
 0xefb   :  { %v2157_v7 = vmul.f32 %v2636_v6, %v2634_v2 }
 0xefd   :  { %2585 = vmatmul.mubr.msk.f32.vlgmr.msra.gmra.mxu0 %vm395_vm2, %v2157_v7 }
 0xfbd   :  { %v2230_v31 = vpop.f32.mrf.mxu0 }
 0xfbe   :  { %2590 = vmatmul.mubr.msk.f32.vlgmr.msra.gmra.mxu1 %vm395_vm2, %v2230_v31 }
 0xfbf   :  { %v2586_v8 = vpop.f32.mrf.mxu0 }
0x107e   :  { %v2303_v9 = vpop.f32.mrf.mxu1 }
0x107f   :  { %v2307_v10 = vadd.f32 %v2303_v9, %v2068_v4 }
0x1080   :  { %v2591_v11 = vpop.f32.mrf.mxu1 }
0x1081   :  { %v2308_v13 = vadd.f32 %v3031_v16, %v2307_v10 }
0x1083   :  { %2309 = vst.msk [vmem:[#allocation11 + $0x8] sm:$0xff] %vm115_vm0, %v2308_v13 }
0x1084   :  { %2748 = shalt.err (!%p2745_p1)
}
0x1085   :  { %2321 = dma.vmem_to_hbm [thread:$0]  %s2316_s18, 256, %s3104_s8, [#allocation4], %s2767_s10, %s2767_s10, %s2768_s11  }
0x1086   :  { %2763 = dma.done.wait [#allocation4], 256  }
0x1087   :  { %2764 = vsyncadd [#allocation4], 4294967040 }
0x1088   :  { %2325 = vsyncpa [#allocation3], 1 }
0x1089   :  { %2326 = vsyncpa [#allocation6], 1 }
0x108a   :  { %2327 = vsyncpa [#allocation9], 1 }
0x108b   :  { %2328 = vsyncpa [#allocation4], 1 }

</bundles_post_ra>
